<compile_context>
chip_gen: v6e
topology: v6e:2x2x1
jax: 0.10.0
libtpu: 0.0.40
codegen_flags: <defaults>
</compile_context>

<pallas_src>
import jax
import jax.numpy as jnp
from jax.experimental import pallas as pl
from jax.experimental.pallas import tpu as pltpu


def w_lstm_ac_kernel(xh1_ref, c_ref, wg_ref, wh_ref, bh_ref, out_ref):
    xh1 = xh1_ref[...]          # [Bp, I+H+1]  (last column == 1.0 folds the gate bias)
    c = c_ref[...]              # [Bp, H]

    # Single fused gate matmul on the MXU, f32 accumulation:
    #   gates = x @ W_ih^T + h @ W_hh^T + (b_ih + b_hh)
    gates = jnp.dot(xh1, wg_ref[...], preferred_element_type=jnp.float32)   # [Bp, 4H]

    H = c.shape[-1]
    i_g = jax.nn.sigmoid(gates[:, 0 * H:1 * H])
    f_g = jax.nn.sigmoid(gates[:, 1 * H:2 * H])
    g_g = jnp.tanh(gates[:, 2 * H:3 * H])
    o_g = jax.nn.sigmoid(gates[:, 3 * H:4 * H])

    c_n = f_g * c + i_g * g_g
    h_n = o_g * jnp.tanh(c_n)

    # Fused action+value head: one matmul -> [Bp, A+1]
    head = jnp.dot(h_n, wh_ref[...], preferred_element_type=jnp.float32) + bh_ref[...]

    A1 = head.shape[-1]                                             # A + 1
    col = jax.lax.broadcasted_iota(jnp.int32, head.shape, dimension=1)
    is_action = col < (A1 - 1)

    # Numerically-stable softmax over the first A lanes only (value lane masked out).
    logits = jnp.where(is_action, head, jnp.float32(-jnp.inf))
    m = jnp.max(logits, axis=-1, keepdims=True)
    e = jnp.exp(logits - m)                                         # value lane -> 0
    inv = pl.reciprocal(jnp.sum(e, axis=-1, keepdims=True), approx=True)
    sm = e * inv

    # First A lanes: softmax(action); last lane: raw value.
    out_ref[...] = jnp.where(is_action, sm, head)


def prepare_params(params):
    """One-time parameter prep (transposes + fusion) hoisted out of the step path."""
    w_ih_t = params["w_ih"].T                                   # [I, 4H]
    w_hh_t = params["w_hh"].T                                   # [H, 4H]
    b_g = (params["b_ih"] + params["b_hh"]).reshape(1, -1)      # [1, 4H] pre-summed bias
    w_gates = jnp.concatenate([w_ih_t, w_hh_t, b_g], axis=0)    # [I+H+1, 4H]

    w_heads = jnp.concatenate([params["w_action"].T, params["w_value"].T], axis=1)  # [H, A+1]
    b_heads = jnp.concatenate([params["b_action"], params["b_value"]]).reshape(1, -1)  # [1, A+1]

    return {
        "w_gates": jnp.asarray(w_gates, jnp.float32),
        "w_heads": jnp.asarray(w_heads, jnp.float32),
        "b_heads": jnp.asarray(b_heads, jnp.float32),
        "hidden0": params["hidden0"],
        "cell0": params["cell0"],
    }


def w_lstm_ac_forward(x, hidden, cell, prepped):
    """Full W_LSTM_AC.forward; one Pallas kernel invocation, one fused output."""
    B, _ = x.shape
    A1 = prepped["w_heads"].shape[1]
    A = A1 - 1

    # Pad batch to a multiple of 8 (f32 sublane count) so loads/stores are unmasked.
    Bp = ((B + 7) // 8) * 8
    ones = jnp.ones((B, 1), jnp.float32)
    xh1 = jnp.concatenate([x.astype(jnp.float32), hidden.astype(jnp.float32), ones], axis=1)
    pad = Bp - B
    if pad:
        xh1 = jnp.pad(xh1, ((0, pad), (0, 0)))
        cell_p = jnp.pad(cell.astype(jnp.float32), ((0, pad), (0, 0)))
    else:
        cell_p = cell.astype(jnp.float32)

    full = lambda shape: pl.BlockSpec(shape, lambda: tuple(0 for _ in shape))

    out = pl.pallas_call(
        w_lstm_ac_kernel,
        out_shape=jax.ShapeDtypeStruct((Bp, A1), jnp.float32),
        grid=(),
        in_specs=[
            full(xh1.shape),
            full(cell_p.shape),
            full(prepped["w_gates"].shape),
            full(prepped["w_heads"].shape),
            full(prepped["b_heads"].shape),
        ],
        out_specs=full((Bp, A1)),
        compiler_params=pltpu.CompilerParams(vmem_limit_bytes=32 << 20),
    )(xh1, cell_p, prepped["w_gates"], prepped["w_heads"], prepped["b_heads"])

    action = out[:B, :A]
    value = out[:B, A:A1]
    # The PyTorch forward returns the INPUT hidden/cell, not h_n/c_n -> no kernel output needed.
    return action, value, hidden, cell


def init_params(key, input_len, hidden_len, action_len, batch_size):
    """Deterministic parameter initialization (shapes match the PyTorch module)."""
    ks = jax.random.split(key, 8)
    s = 0.1
    return {
        # W_LSTM_cell (standard LSTM cell parameterization)
        "w_ih": s * jax.random.normal(ks[0], (4 * hidden_len, input_len), jnp.float32),
        "w_hh": s * jax.random.normal(ks[1], (4 * hidden_len, hidden_len), jnp.float32),
        "b_ih": s * jax.random.normal(ks[2], (4 * hidden_len,), jnp.float32),
        "b_hh": s * jax.random.normal(ks[3], (4 * hidden_len,), jnp.float32),
        # layer_action: Linear(hidden_len, action_len)
        "w_action": s * jax.random.normal(ks[4], (action_len, hidden_len), jnp.float32),
        "b_action": s * jax.random.normal(ks[5], (action_len,), jnp.float32),
        # layer_value: Linear(hidden_len, 1)
        "w_value": s * jax.random.normal(ks[6], (1, hidden_len), jnp.float32),
        "b_value": s * jax.random.normal(ks[7], (1,), jnp.float32),
        # hidden0 / cell0 learnable initial states (zeros, like the module)
        "hidden0": jnp.zeros((batch_size, hidden_len), jnp.float32),
        "cell0": jnp.zeros((batch_size, hidden_len), jnp.float32),
    }


def _reference_forward(x, hidden, cell, params):
    """Pure-JAX reference of the PyTorch module (for correctness check)."""
    gates = (x @ params["w_ih"].T + params["b_ih"]
             + hidden @ params["w_hh"].T + params["b_hh"])
    H = hidden.shape[-1]
    i_g = jax.nn.sigmoid(gates[:, 0 * H:1 * H])
    f_g = jax.nn.sigmoid(gates[:, 1 * H:2 * H])
    g_g = jnp.tanh(gates[:, 2 * H:3 * H])
    o_g = jax.nn.sigmoid(gates[:, 3 * H:4 * H])
    c_n = f_g * cell + i_g * g_g
    h_n = o_g * jnp.tanh(c_n)
    action = jax.nn.softmax(h_n @ params["w_action"].T + params["b_action"], axis=-1)
    value = h_n @ params["w_value"].T + params["b_value"]
    return action, value, hidden, cell


if __name__ == "__main__":
    batch_size = 2
    input_len = 16
    hidden_len = 32
    action_len = 4

    key = jax.random.PRNGKey(0)
    k_param, k_x = jax.random.split(key)

    params = init_params(k_param, input_len, hidden_len, action_len, batch_size)
    prepped = prepare_params(params)          # one-time weight fusion / transpose
    x = jax.random.normal(k_x, (batch_size, input_len), jnp.float32)

    # forward(input) with hidden=None, cell=None -> use hidden0 / cell0
    action, value, hidden, cell = w_lstm_ac_forward(
        x, prepped["hidden0"], prepped["cell0"], prepped)
    jax.block_until_ready((action, value, hidden, cell))

    assert action.shape == (batch_size, action_len)
    assert value.shape == (batch_size, 1)
    assert hidden.shape == (batch_size, hidden_len)
    assert cell.shape == (batch_size, hidden_len)
    # softmax rows sum to ~1 (approx reciprocal on the EUP -> slightly loose tol)
    assert jnp.allclose(jnp.sum(action, axis=-1), 1.0, atol=2e-3)

    # numerics vs. pure-JAX reference
    a_ref, v_ref, h_ref, c_ref = _reference_forward(
        x, params["hidden0"], params["cell0"], params)
    assert jnp.allclose(action, a_ref, atol=2e-3, rtol=2e-3)
    assert jnp.allclose(value, v_ref, atol=1e-4, rtol=1e-4)
    assert jnp.array_equal(hidden, h_ref) and jnp.array_equal(cell, c_ref)

    print("KERNEL_OK")
</pallas_src>

<mosaic_0001>
module attributes {stable_mosaic.version = 11 : i64} {
  func.func @w_lstm_ac_kernel(%arg0: memref<8x49xf32, #tpu.memory_space<vmem>>, %arg1: memref<8x32xf32, #tpu.memory_space<vmem>>, %arg2: memref<49x128xf32, #tpu.memory_space<vmem>>, %arg3: memref<32x5xf32, #tpu.memory_space<vmem>>, %arg4: memref<1x5xf32, #tpu.memory_space<vmem>>, %arg5: memref<8x5xf32, #tpu.memory_space<vmem>>) attributes {dimension_semantics = [], scalar_prefetch = 0 : i64, scratch_operands = 0 : i64, tpu.core_type = #tpu.core_type<tc>} {
    %c0 = arith.constant 0 : index
    %c0_0 = arith.constant 0 : index
    %0 = vector.load %arg0[%c0, %c0_0] : memref<8x49xf32, #tpu.memory_space<vmem>>, vector<8x49xf32>
    %c0_1 = arith.constant 0 : index
    %c0_2 = arith.constant 0 : index
    %1 = vector.load %arg1[%c0_1, %c0_2] : memref<8x32xf32, #tpu.memory_space<vmem>>, vector<8x32xf32>
    %c0_3 = arith.constant 0 : index
    %c0_4 = arith.constant 0 : index
    %2 = vector.load %arg2[%c0_3, %c0_4] : memref<49x128xf32, #tpu.memory_space<vmem>>, vector<49x128xf32>
    %cst = arith.constant dense<0.000000e+00> : vector<8x128xf32>
    %3 = tpu.matmul %0, %2, %cst {dimension_numbers = #tpu.dot_dimension_numbers<[1], [0], [0], [1], [0, 0, 1, 1], [], []>} : vector<8x49xf32>, vector<49x128xf32>, vector<8x128xf32> -> vector<8x128xf32>
    %4 = vector.extract_strided_slice %3 {offsets = [0, 0], sizes = [8, 32], strides = [1, 1]} : vector<8x128xf32> to vector<8x32xf32>
    %5 = arith.negf %4 : vector<8x32xf32>
    %6 = math.exp %5 : vector<8x32xf32>
    %cst_5 = arith.constant 1.000000e+00 : f32
    %7 = vector.broadcast %cst_5 : f32 to vector<8x32xf32>
    %8 = arith.addf %7, %6 : vector<8x32xf32>
    %9 = arith.divf %7, %8 : vector<8x32xf32>
    %10 = vector.extract_strided_slice %3 {offsets = [0, 32], sizes = [8, 32], strides = [1, 1]} : vector<8x128xf32> to vector<8x32xf32>
    %11 = arith.negf %10 : vector<8x32xf32>
    %12 = math.exp %11 : vector<8x32xf32>
    %cst_6 = arith.constant 1.000000e+00 : f32
    %13 = vector.broadcast %cst_6 : f32 to vector<8x32xf32>
    %14 = arith.addf %13, %12 : vector<8x32xf32>
    %15 = arith.divf %13, %14 : vector<8x32xf32>
    %16 = vector.extract_strided_slice %3 {offsets = [0, 64], sizes = [8, 32], strides = [1, 1]} : vector<8x128xf32> to vector<8x32xf32>
    %17 = math.tanh %16 : vector<8x32xf32>
    %18 = vector.extract_strided_slice %3 {offsets = [0, 96], sizes = [8, 32], strides = [1, 1]} : vector<8x128xf32> to vector<8x32xf32>
    %19 = arith.negf %18 : vector<8x32xf32>
    %20 = math.exp %19 : vector<8x32xf32>
    %cst_7 = arith.constant 1.000000e+00 : f32
    %21 = vector.broadcast %cst_7 : f32 to vector<8x32xf32>
    %22 = arith.addf %21, %20 : vector<8x32xf32>
    %23 = arith.divf %21, %22 : vector<8x32xf32>
    %24 = arith.mulf %15, %1 : vector<8x32xf32>
    %25 = arith.mulf %9, %17 : vector<8x32xf32>
    %26 = arith.addf %24, %25 : vector<8x32xf32>
    %27 = math.tanh %26 : vector<8x32xf32>
    %28 = arith.mulf %23, %27 : vector<8x32xf32>
    %c0_8 = arith.constant 0 : index
    %c0_9 = arith.constant 0 : index
    %29 = vector.load %arg3[%c0_8, %c0_9] : memref<32x5xf32, #tpu.memory_space<vmem>>, vector<32x5xf32>
    %cst_10 = arith.constant dense<0.000000e+00> : vector<8x5xf32>
    %30 = tpu.matmul %28, %29, %cst_10 {dimension_numbers = #tpu.dot_dimension_numbers<[1], [0], [0], [1], [0, 0, 1, 1], [], []>} : vector<8x32xf32>, vector<32x5xf32>, vector<8x5xf32> -> vector<8x5xf32>
    %c0_11 = arith.constant 0 : index
    %c0_12 = arith.constant 0 : index
    %31 = vector.load %arg4[%c0_11, %c0_12] : memref<1x5xf32, #tpu.memory_space<vmem>>, vector<1x5xf32>
    %32 = vector.broadcast %31 : vector<1x5xf32> to vector<8x5xf32>
    %33 = arith.addf %30, %32 : vector<8x5xf32>
    %34 = tpu.iota {dimensions = array<i32: 1>} : vector<8x5xi32>
    %c4_i32 = arith.constant 4 : i32
    %35 = vector.broadcast %c4_i32 : i32 to vector<8x5xi32>
    %36 = arith.cmpi slt, %34, %35 : vector<8x5xi32>
    %cst_13 = arith.constant 0xFF800000 : f32
    %37 = vector.broadcast %cst_13 : f32 to vector<8x5xf32>
    %38 = arith.select %36, %33, %37 : vector<8x5xi1>, vector<8x5xf32>
    %cst_14 = arith.constant dense<0xFF800000> : vector<8xf32>
    %39 = vector.multi_reduction <maximumf>, %38, %cst_14 [1] : vector<8x5xf32> to vector<8xf32>
    %40 = vector.shape_cast %39 : vector<8xf32> to vector<8x1xf32>
    %41 = vector.broadcast %40 : vector<8x1xf32> to vector<8x5xf32>
    %42 = arith.subf %38, %41 : vector<8x5xf32>
    %43 = math.exp %42 : vector<8x5xf32>
    %cst_15 = arith.constant dense<0.000000e+00> : vector<8xf32>
    %44 = vector.multi_reduction <add>, %43, %cst_15 [1] : vector<8x5xf32> to vector<8xf32>
    %45 = vector.shape_cast %44 : vector<8xf32> to vector<8x1xf32>
    %46 = tpu.reciprocal %45 {approx = true} : vector<8x1xf32> -> vector<8x1xf32>
    %47 = vector.broadcast %46 : vector<8x1xf32> to vector<8x5xf32>
    %48 = arith.mulf %43, %47 : vector<8x5xf32>
    %49 = arith.select %36, %48, %33 : vector<8x5xi1>, vector<8x5xf32>
    %c0_16 = arith.constant 0 : index
    %c0_17 = arith.constant 0 : index
    %50 = vector.load %arg5[%c0_16, %c0_17] : memref<8x5xf32, #tpu.memory_space<vmem>>, vector<8x5xf32>
    tpu.vector_store %arg5[%c0_16, %c0_17], %49 {strides = array<i32>} : memref<8x5xf32, #tpu.memory_space<vmem>>, vector<8x5xf32>,
    return
  }
}

</mosaic_0001>

<bundles_post_ra>
// kernel: tpu_custom_call.1
= control target key start
LH: loop header
LB: loop body
LE: loop exit
PB: predicated region body
PF: predicated region fallthrough
CT: control target
= control target key end

     0   :  { %10 = vsyncpa [#allocation3], 0  ;;  %s455_s0 = inlined_call_operand.vmem [shape: f32[8,49], index: 0, kind: input, shape index: {}]   ;;  %s456_s1 = inlined_call_operand.vmem [shape: f32[8,32], index: 1, kind: input, shape index: {}]   ;;  %s457_s2 = inlined_call_operand.hbm [shape: f32[49,128], index: 2, kind: input, shape index: {}]   ;;  %s458_s3 = inlined_call_operand.vmem [shape: f32[32,5], index: 3, kind: input, shape index: {}]   ;;  %s459_s4 = inlined_call_operand.vmem [shape: f32[1,5], index: 4, kind: input, shape index: {}]   ;;  %s460_s5 = inlined_call_operand.hbm [shape: f32[8,5], index: 5, kind: output, shape index: {}]  }
   0x1   :  { %11 = vsyncpa [#allocation4], 0  ;;  %s380_s18 = smov [#allocation2]  }
   0x2   :  { %s21_s19 = sshll.u32 %s380_s18, 4  ;;  %s22_s19 = int_to_ptr.vmem [resolvable:$true] %s21_s19 }
   0x3   :  { %s344_s20 = scalar_lea.vmem %s22_s19, 896  ;;  %p349_p1 = scmp.lt.s32.totalorder %s22_s19, %s22_s19 }
   0x4   :  { %p345_p0 = scmp.ne.s32.totalorder %s22_s19, %s344_s20  ;;  %p350_p2 = scmp.lt.s32.totalorder %s344_s20, %s344_s20 }
   0x6   :  { %p351_p3 = por %p350_p2, %p349_p1 }
   0x8   :  { %p352_p4 = pnand %p351_p3, %p345_p0 }
   0xa   :  { %355 = shalt.err (!%p352_p4)
}
   0xb   :  { %s381_s21 = smov 128   ;;  %s382_s22 = smov 8  }
   0xc   :  { %27 = dma.hbm_to_vmem [thread:$0]  %s457_s2, 896, %s22_s19, [#allocation3], %s381_s21, %s381_s21, %s382_s22  }
   0xd   :  { %376 = dma.done.wait [#allocation3], 896  }
   0xe   :  { %377 = vsyncadd [#allocation3], 4294966400  ;;  %v383_v0 = vmov 0.0   ;;  %vm384_vm0 = vmmov 0   ;;  %vm48_vm1 = vcmask 1040384   ;;  %v42_v2 = vld [vmem:[#allocation2 + $0x28] sm:$0xff]  ;;  %v237_v31 = vlaneseq }
   0xf   :  { %288 = vmatprep.subr.mxu0 %v383_v0  ;;  %302 = vmatprep.mubr.msk.f32.mxu0 %vm384_vm0, %v383_v0  ;;  %v43_v1 = vld [vmem:[#allocation2 + $0x30] sm:$0x1]  ;;  %v41_v3 = vld [vmem:[#allocation2 + $0x20] sm:$0xff]  ;;  %v40_v4 = vld [vmem:[#allocation2 + $0x18] sm:$0xff]  ;;  %vm44_vm2 = vcmask 400384   ;;  %s385_s26 = smov 64  }
  0x10   :  { %305 = vmatprep.subr.mxu1 %v383_v0  ;;  %313 = vmatprep.mubr.msk.f32.mxu1 %vm384_vm0, %v383_v0  ;;  %v39_v5 = vld [vmem:[#allocation2 + $0x10] sm:$0xff]  ;;  %v38_v6 = vld [vmem:[#allocation2 + $0x8] sm:$0xff]  ;;  %v37_v7 = vld [vmem:[#allocation2] sm:$0xff]  ;;  %s386_s29 = smov 32   ;;  %vm164_vm3 = vcmask 261120   ;;  %v238_v32 = vand.u32 127, %v237_v31 }
  0x11   :  { %289 = vmatpush3.msk.msra.mxu0 %vm48_vm1, %v43_v1  ;;  %v35_v8 = vld [vmem:[%s455_s0] sm:$0xff]  ;;  %v153_v23 = vld [vmem:[%s458_s3 + $0x18] sm:$0xff]  ;;  %v152_v24 = vld [vmem:[%s458_s3 + $0x10] sm:$0xff]  ;;  %vm241_vm5 = vcmask 39936  }
  0x12   :  { %290 = vmatprep.subr.mxu0 %v383_v0  ;;  %v36_v12 = vld [vmem:[%s456_s1] sm:$0xff]  ;;  %306 = vmatpush3.msra.mxu1 %v153_v23  ;;  %v151_v25 = vld [vmem:[%s458_s3 + $0x8] sm:$0xff]  ;;  %vm239_vm4 = vcmp.lt.s32.totalorder %v238_v32, 4 }
  0x13   :  { %291 = vmatpush3.msra.mxu0 %v42_v2  ;;  %307 = vmatprep.subr.mxu1 %v383_v0  ;;  %v150_v26 = vld [vmem:[%s458_s3] sm:$0xff]  ;;  %s387_s3 = smov [#allocation5]  }
  0x14   :  { %292 = vmatprep.subr.mxu0 %v383_v0  ;;  %308 = vmatpush3.msra.mxu1 %v152_v24  ;;  %v273_v33 = vld [vmem:[%s459_s4] ss:$0 sm:$0xff]  ;;  %s261_s4 = sshll.u32 %s387_s3, 4  ;;  %s262_s4 = int_to_ptr.vmem [resolvable:$true] %s261_s4 }
  0x15   :  { %293 = vmatpush3.msra.mxu0 %v41_v3  ;;  %309 = vmatprep.subr.mxu1 %v383_v0  ;;  %s356_s13 = scalar_lea.vmem %s262_s4, 128  ;;  %p361_p6 = scmp.lt.s32.totalorder %s262_s4, %s262_s4 }
  0x16   :  { %294 = vmatprep.subr.mxu0 %v383_v0  ;;  %310 = vmatpush3.msra.mxu1 %v151_v25  ;;  %p357_p5 = scmp.ne.s32.totalorder %s262_s4, %s356_s13  ;;  %p362_p7 = scmp.lt.s32.totalorder %s356_s13, %s356_s13 }
  0x17   :  { %295 = vmatpush3.msra.mxu0 %v40_v4  ;;  %311 = vmatprep.subr.mxu1 %v383_v0 }
  0x18   :  { %296 = vmatprep.subr.mxu0 %v383_v0  ;;  %312 = vmatpush3.msra.mxu1 %v150_v26  ;;  %p363_p8 = por %p362_p7, %p361_p6 }
  0x19   :  { %297 = vmatpush3.msra.mxu0 %v39_v5 }
  0x1a   :  { %298 = vmatprep.subr.mxu0 %v383_v0  ;;  %p364_p9 = pnand %p363_p8, %p357_p5 }
  0x1b   :  { %299 = vmatpush3.msra.mxu0 %v38_v6 }
  0x1c   :  { %300 = vmatprep.subr.mxu0 %v383_v0 }
  0x1d   :  { %301 = vmatpush3.msra.mxu0 %v37_v7 }
  0x1e   :  { %303 = vmatmul.mubr.msk.f32.vlgmr.msra.gmra.mxu0 %vm44_vm2, %v35_v8 }
  0xde   :  { %v118_v9 = vpop.f32.mrf.mxu0 }
  0xdf   :  { %324 = vtanh.f32 %v118_v9  ;;  %v272_v13 = vmul.f32 -1.442695, %v118_v9 }
  0xe0   :  { %v304_v10 = vpop.f32.mrf.mxu0 }
  0xe1   :  { %326 = vpow2.f32 %v272_v13 }
  0xec   :  { %v325_v11 = vpop.eup %324 }
  0xed   :  { %135 = vrot.lane.b32.xlu0 %v325_v11, %s385_s26 }
  0xee   :  { %v327_v14 = vpop.eup %326 }
  0xef   :  { %v125_v15 = vadd.f32 1.0, %v327_v14 }
  0xf1   :  { %130 = vrot.lane.b32.xlu0 %v36_v12, %s386_s29  ;;  %328 = vrcp.f32 %v125_v15 }
  0xfe   :  { %v329_v16 = vpop.eup %328 }
 0x15f   :  { %v136_v17 = vpop.permute.xlu0 %135 }
 0x160   :  { %v138_v18 = vmul.f32 %v329_v16, %v136_v17 }
 0x162   :  { %140 = vrot.lane.b32.xlu1 %v138_v18, %s386_s29 }
 0x163   :  { %v131_v19 = vpop.permute.xlu0 %130 }
 0x164   :  { %v133_v20 = vmul.f32 %v329_v16, %v131_v19 }
 0x1d4   :  { %v141_v21 = vpop.permute.xlu1 %140 }
 0x1d5   :  { %v143_v22 = vadd.f32 %v141_v21, %v133_v20 }
 0x1d7   :  { %330 = vtanh.f32 %v143_v22 }
 0x1e4   :  { %v331_v27 = vpop.eup %330 }
 0x1e5   :  { %146 = vrot.lane.b32.xlu1 %v331_v27, %s385_s26 }
 0x257   :  { %v147_v28 = vpop.permute.xlu1 %146 }
 0x258   :  { %v149_v29 = vmul.f32 %v329_v16, %v147_v28 }
 0x25a   :  { %162 = vrot.lane.b32.xlu0 %v149_v29, %s386_s29 }
 0x2cc   :  { %v163_v30 = vpop.permute.xlu0 %162 }
 0x2cd   :  { %314 = vmatmul.mubr.msk.f32.vlgmr.msra.gmra.mxu1 %vm164_vm3, %v163_v30 }
 0x38d   :  { %v233_v34 = vpop.f32.mrf.mxu1 }
 0x38e   :  { %v234_v35 = vadd.f32 %v273_v33, %v233_v34 }
 0x38f   :  { %v315_v36 = vpop.f32.mrf.mxu1 }
 0x390   :  { %v240_v37 = vsel %vm239_vm4, %v234_v35, -inf }
 0x391   :  { %v242_v38 = vsel %vm241_vm5, %v240_v37, -inf }
 0x392   :  { %243 = vmax.xlane.f32.xlu1 %v242_v38 }
 0x41b   :  { %v244_v39 = vpop.xlane.xlu1 %243 }
 0x41c   :  { %v245_v40 = vsub.f32 %v240_v37, %v244_v39 }
 0x41e   :  { %v246_v41 = vmul.f32 1.442695, %v245_v40 }
 0x420   :  { %332 = vpow2.f32 %v246_v41 }
 0x42d   :  { %v333_v42 = vpop.eup %332 }
 0x42e   :  { %v248_v43 = vsel %vm241_vm5, %v333_v42, 0.0 }
 0x42f   :  { %249 = vadd.xlane.f32.xlu0 %v248_v43 }
 0x4b8   :  { %v250_v44 = vpop.xlane.xlu0 %249 }
 0x4b9   :  { %334 = vrcp.f32 %v250_v44 }
 0x4c6   :  { %v335_v45 = vpop.eup %334 }
 0x4c7   :  { %v252_v46 = vmul.f32 %v335_v45, %v333_v42 }
 0x4c9   :  { %v253_v47 = vsel %vm239_vm4, %v252_v46, %v234_v35 }
 0x4ca   :  { %254 = vst.msk [vmem:[#allocation5] sm:$0xff] %vm241_vm5, %v253_v47 }
 0x4cb   :  { %367 = shalt.err (!%p364_p9)
}
 0x4cc   :  { %264 = dma.vmem_to_hbm [thread:$0]  %s262_s4, 128, %s460_s5, [#allocation4]  }
 0x4cd   :  { %378 = dma.done.wait [#allocation4], 128  }
 0x4ce   :  { %379 = vsyncadd [#allocation4], 4294967168 }
 0x4cf   :  { %268 = vsyncpa [#allocation3], 1 }
 0x4d0   :  { %269 = vsyncpa [#allocation4], 1 }

</bundles_post_ra>
